<compile_context>
chip_gen: v7x
topology: tpu7x:2x2x1
jax: 0.10.0
libtpu: 0.0.40
codegen_flags: <defaults>
</compile_context>

<pallas_src>
from functools import partial

import jax
import jax.numpy as jnp
from jax.experimental import pallas as pl
from jax.experimental.pallas import tpu as pltpu

NEG_INF = float("-inf")


def _local_stats_kernel(sim_ref,
                        rmax_ref, m2r_ref, lser_ref,
                        cmax_ref, m2c_ref, lsec_ref,
                        *, inv_t):
    # (Bt, n1, n2) slab; upcast after the (possibly bf16) block is already in VMEM.
    s = sim_ref[...].astype(jnp.float32)

    rmax = jnp.max(s, axis=2, keepdims=True)             # (Bt, n1, 1) row maxima
    cmax = jnp.max(s, axis=1, keepdims=True)             # (Bt, 1, n2) col maxima
    row_mask = s == rmax                                  # entries equal to their row max
    col_mask = s == cmax                                  # entries equal to their col max

    # Per-batch-element stabilizer (derived from the already-reduced rmax, not from s).
    mb = jnp.max(rmax, axis=1, keepdims=True)             # (Bt, 1, 1)

    # Single full-tensor exp, shared by the row and the col direction; exponents <= 0.
    e = jnp.exp((s - mb) * inv_t)                          # (Bt, n1, n2)

    row_s = jnp.sum(jnp.where(row_mask, 0.0, e), axis=2)   # (Bt, n1)
    col_s = jnp.sum(jnp.where(col_mask, 0.0, e), axis=1)   # (Bt, n2)

    # Max of the masked matrix per row / per col (the global neg_row.max()/neg_col.max()
    # are recovered in the epilogue as the max over these).
    m2r = jnp.max(jnp.where(row_mask, NEG_INF, s), axis=2)   # (Bt, n1)
    m2c = jnp.max(jnp.where(col_mask, NEG_INF, s), axis=1)   # (Bt, n2)

    mb2 = mb[:, :, 0]                                      # (Bt, 1)

    rmax_ref[...] = jnp.squeeze(rmax, axis=2)[None]        # (1, Bt, n1)
    m2r_ref[...] = m2r[None]
    lser_ref[...] = (mb2 * inv_t + jnp.log(row_s))[None]   # logsumexp(neg_row / T)

    cmax_ref[...] = jnp.squeeze(cmax, axis=1)[None]        # (1, Bt, n2)
    m2c_ref[...] = m2c[None]
    lsec_ref[...] = (mb2 * inv_t + jnp.log(col_s))[None]   # logsumexp(neg_col / T)


def local_align_pallas(similarity_matrix, temperature=0.3,
                       target_block_bytes=4 * 1024 * 1024):
    sim = similarity_matrix                 # native dtype; upcast happens inside the kernel
    B, n1, n2 = sim.shape
    inv_t = float(1.0 / temperature)

    # Largest batch tile (divisor of B) whose input block stays <= ~4 MiB so the
    # double-buffered input fits comfortably under the scoped-VMEM limits of all chips.
    per_batch_bytes = n1 * n2 * jnp.dtype(sim.dtype).itemsize
    bt = 1
    for cand in range(1, B + 1):
        if B % cand == 0 and cand * per_batch_bytes <= target_block_bytes:
            bt = cand
    # TODO(synk): if a single (1, n1, n2) slab alone exceeds the VMEM budget, an
    # online-softmax tiling over n1 (flash-style running col stats) would be required.
    nb = B // bt

    block_bytes = bt * per_batch_bytes
    vmem_limit = min(100 * 1024 * 1024,
                     max(32 * 1024 * 1024, 3 * block_bytes + 4 * 1024 * 1024))

    stat_row = jax.ShapeDtypeStruct((nb, bt, n1), jnp.float32)
    stat_col = jax.ShapeDtypeStruct((nb, bt, n2), jnp.float32)
    row_spec = pl.BlockSpec((1, bt, n1), lambda b: (b, 0, 0))
    col_spec = pl.BlockSpec((1, bt, n2), lambda b: (b, 0, 0))
    sim_spec = pl.BlockSpec((bt, n1, n2), lambda b: (b, 0, 0))

    rmax, m2r, lser, cmax, m2c, lsec = pl.pallas_call(
        partial(_local_stats_kernel, inv_t=inv_t),
        out_shape=(stat_row, stat_row, stat_row, stat_col, stat_col, stat_col),
        grid=(nb,),
        in_specs=[sim_spec],
        out_specs=(row_spec, row_spec, row_spec, col_spec, col_spec, col_spec),
        compiler_params=pltpu.CompilerParams(
            dimension_semantics=("parallel",),
            vmem_limit_bytes=int(vmem_limit)),
    )(sim)

    # Tiny O(B*(n1+n2)) epilogue: fold in the global scalars and the eps clamp (log-space),
    # then reduce to the scalar loss.  Matches the torch forward exactly up to rounding.
    eps_dtype = sim.dtype if jnp.issubdtype(sim.dtype, jnp.floating) else jnp.float32
    log_eps = jnp.log(jnp.float32(jnp.finfo(eps_dtype).eps))
    posg = jnp.max(rmax)          # == similarity_matrix.max() (= pos_row.max() = pos_col.max())
    negr = jnp.max(m2r)           # == neg_row.max()
    negc = jnp.max(m2c)           # == neg_col.max()

    row_terms = (posg - rmax) * inv_t + jnp.maximum(lser - negr * inv_t, log_eps)
    col_terms = (posg - cmax) * inv_t + jnp.maximum(lsec - negc * inv_t, log_eps)
    row_loss = jnp.sum(row_terms) / (B * n1)
    col_loss = jnp.sum(col_terms) / (B * n2)
    return (row_loss + col_loss) * 0.5


def local_align_reference(sim, temperature=0.3):
    """Pure-JAX transcription of the torch forward (for verification)."""
    sim = sim.astype(jnp.float32)
    B, n1, n2 = sim.shape
    eps = jnp.finfo(jnp.float32).eps

    pos_row = jnp.max(sim, axis=2, keepdims=True)
    neg_row = jnp.where(sim == pos_row, NEG_INF, sim)
    pos_exp_row = jnp.exp((pos_row - jnp.max(pos_row)) / temperature)
    neg_exp_row = jnp.exp((neg_row - jnp.max(neg_row)) / temperature)
    row_sum = jnp.maximum(jnp.sum(neg_exp_row, axis=2), eps)
    row_loss = -jnp.sum(jnp.log(jnp.squeeze(pos_exp_row, -1) / row_sum)) / (B * n1)

    pos_col = jnp.max(sim, axis=1, keepdims=True)
    neg_col = jnp.where(sim == pos_col, NEG_INF, sim)
    pos_exp_col = jnp.exp((pos_col - jnp.max(pos_col)) / temperature)
    neg_exp_col = jnp.exp((neg_col - jnp.max(neg_col)) / temperature)
    col_sum = jnp.maximum(jnp.sum(neg_exp_col, axis=1), eps)
    col_loss = -jnp.sum(jnp.log(jnp.squeeze(pos_exp_col, 1) / col_sum)) / (B * n2)

    return (row_loss + col_loss) / 2


if __name__ == "__main__":
    key = jax.random.PRNGKey(0)
    k1, k2 = jax.random.split(key)

    loss_fn = jax.jit(partial(local_align_pallas, temperature=0.3))

    # Case 1: small generic shape.
    B, n1, n2 = 2, 8, 16
    sim = jax.random.normal(k1, (B, n1, n2), dtype=jnp.float32)
    loss = jax.block_until_ready(loss_fn(sim))
    ref = local_align_reference(sim, temperature=0.3)
    assert jnp.allclose(loss, ref, rtol=1e-5, atol=1e-5), (float(loss), float(ref))

    # Case 2: larger batch (exercises batch tiling) + duplicated columns (exercises the
    # multi-entry row-max masking path exactly like torch's `neg_row[pos_row == sim] = -inf`).
    base = jax.random.normal(k2, (4, 16, 12), dtype=jnp.float32)
    sim2 = jnp.concatenate([base, base], axis=2)          # (4, 16, 24) with row-wise ties
    loss2 = jax.block_until_ready(loss_fn(sim2))
    ref2 = local_align_reference(sim2, temperature=0.3)
    assert jnp.allclose(loss2, ref2, rtol=1e-5, atol=1e-5), (float(loss2), float(ref2))

    print("KERNEL_OK")
</pallas_src>

<mosaic_0001>
module attributes {stable_mosaic.version = 11 : i64} {
  func.func @_local_stats_kernel(%arg0: i32, %arg1: memref<2x8x16xf32, #tpu.memory_space<vmem>>, %arg2: memref<1x2x8xf32, #tpu.memory_space<vmem>>, %arg3: memref<1x2x8xf32, #tpu.memory_space<vmem>>, %arg4: memref<1x2x8xf32, #tpu.memory_space<vmem>>, %arg5: memref<1x2x16xf32, #tpu.memory_space<vmem>>, %arg6: memref<1x2x16xf32, #tpu.memory_space<vmem>>, %arg7: memref<1x2x16xf32, #tpu.memory_space<vmem>>) attributes {dimension_semantics = [#tpu.dimension_semantics<parallel>], iteration_bounds = array<i64: 1>, scalar_prefetch = 0 : i64, scratch_operands = 0 : i64, tpu.core_type = #tpu.core_type<tc>, window_params = [{transform_indices = @transform_0, window_bounds = array<i64: 2, 8, 16>}, {transform_indices = @transform_1, window_bounds = array<i64: 1, 2, 8>}, {transform_indices = @transform_2, window_bounds = array<i64: 1, 2, 8>}, {transform_indices = @transform_3, window_bounds = array<i64: 1, 2, 8>}, {transform_indices = @transform_4, window_bounds = array<i64: 1, 2, 16>}, {transform_indices = @transform_5, window_bounds = array<i64: 1, 2, 16>}, {transform_indices = @transform_6, window_bounds = array<i64: 1, 2, 16>}]} {
    %c0 = arith.constant 0 : index
    %c0_0 = arith.constant 0 : index
    %c0_1 = arith.constant 0 : index
    %0 = vector.load %arg1[%c0, %c0_0, %c0_1] : memref<2x8x16xf32, #tpu.memory_space<vmem>>, vector<2x8x16xf32>
    %cst = arith.constant dense<0xFF800000> : vector<2x8xf32>
    %1 = vector.multi_reduction <maximumf>, %0, %cst [2] : vector<2x8x16xf32> to vector<2x8xf32>
    %2 = vector.shape_cast %1 : vector<2x8xf32> to vector<2x8x1xf32>
    %cst_2 = arith.constant dense<0xFF800000> : vector<2x16xf32>
    %3 = vector.multi_reduction <maximumf>, %0, %cst_2 [1] : vector<2x8x16xf32> to vector<2x16xf32>
    %4 = vector.shape_cast %3 : vector<2x16xf32> to vector<2x1x16xf32>
    %5 = vector.broadcast %2 : vector<2x8x1xf32> to vector<2x8x16xf32>
    %6 = arith.cmpf oeq, %0, %5 : vector<2x8x16xf32>
    %7 = vector.broadcast %4 : vector<2x1x16xf32> to vector<2x8x16xf32>
    %8 = arith.cmpf oeq, %0, %7 : vector<2x8x16xf32>
    %cst_3 = arith.constant dense<0xFF800000> : vector<2x1xf32>
    %9 = vector.multi_reduction <maximumf>, %2, %cst_3 [1] : vector<2x8x1xf32> to vector<2x1xf32>
    %10 = vector.shape_cast %9 : vector<2x1xf32> to vector<2x1x1xf32>
    %11 = vector.broadcast %10 : vector<2x1x1xf32> to vector<2x8x16xf32>
    %12 = arith.subf %0, %11 : vector<2x8x16xf32>
    %cst_4 = arith.constant 3.33333325 : f32
    %13 = vector.broadcast %cst_4 : f32 to vector<2x8x16xf32>
    %14 = arith.mulf %12, %13 : vector<2x8x16xf32>
    %15 = math.exp %14 : vector<2x8x16xf32>
    %cst_5 = arith.constant 0.000000e+00 : f32
    %16 = vector.broadcast %cst_5 : f32 to vector<2x8x16xf32>
    %17 = arith.select %6, %16, %15 : vector<2x8x16xi1>, vector<2x8x16xf32>
    %cst_6 = arith.constant dense<0.000000e+00> : vector<2x8xf32>
    %18 = vector.multi_reduction <add>, %17, %cst_6 [2] : vector<2x8x16xf32> to vector<2x8xf32>
    %cst_7 = arith.constant 0.000000e+00 : f32
    %19 = vector.broadcast %cst_7 : f32 to vector<2x8x16xf32>
    %20 = arith.select %8, %19, %15 : vector<2x8x16xi1>, vector<2x8x16xf32>
    %cst_8 = arith.constant dense<0.000000e+00> : vector<2x16xf32>
    %21 = vector.multi_reduction <add>, %20, %cst_8 [1] : vector<2x8x16xf32> to vector<2x16xf32>
    %cst_9 = arith.constant 0xFF800000 : f32
    %22 = vector.broadcast %cst_9 : f32 to vector<2x8x16xf32>
    %23 = arith.select %6, %22, %0 : vector<2x8x16xi1>, vector<2x8x16xf32>
    %cst_10 = arith.constant dense<0xFF800000> : vector<2x8xf32>
    %24 = vector.multi_reduction <maximumf>, %23, %cst_10 [2] : vector<2x8x16xf32> to vector<2x8xf32>
    %cst_11 = arith.constant 0xFF800000 : f32
    %25 = vector.broadcast %cst_11 : f32 to vector<2x8x16xf32>
    %26 = arith.select %8, %25, %0 : vector<2x8x16xi1>, vector<2x8x16xf32>
    %cst_12 = arith.constant dense<0xFF800000> : vector<2x16xf32>
    %27 = vector.multi_reduction <maximumf>, %26, %cst_12 [1] : vector<2x8x16xf32> to vector<2x16xf32>
    %28 = vector.shape_cast %10 : vector<2x1x1xf32> to vector<2x1xf32>
    %29 = vector.shape_cast %2 : vector<2x8x1xf32> to vector<2x8xf32>
    %30 = vector.shape_cast %29 : vector<2x8xf32> to vector<1x2x8xf32>
    %c0_13 = arith.constant 0 : index
    %c0_14 = arith.constant 0 : index
    %c0_15 = arith.constant 0 : index
    %31 = vector.load %arg2[%c0_13, %c0_14, %c0_15] : memref<1x2x8xf32, #tpu.memory_space<vmem>>, vector<1x2x8xf32>
    tpu.vector_store %arg2[%c0_13, %c0_14, %c0_15], %30 {strides = array<i32>} : memref<1x2x8xf32, #tpu.memory_space<vmem>>, vector<1x2x8xf32>,
    %32 = vector.shape_cast %24 : vector<2x8xf32> to vector<1x2x8xf32>
    %c0_16 = arith.constant 0 : index
    %c0_17 = arith.constant 0 : index
    %c0_18 = arith.constant 0 : index
    %33 = vector.load %arg3[%c0_16, %c0_17, %c0_18] : memref<1x2x8xf32, #tpu.memory_space<vmem>>, vector<1x2x8xf32>
    tpu.vector_store %arg3[%c0_16, %c0_17, %c0_18], %32 {strides = array<i32>} : memref<1x2x8xf32, #tpu.memory_space<vmem>>, vector<1x2x8xf32>,
    %cst_19 = arith.constant 3.33333325 : f32
    %34 = vector.broadcast %cst_19 : f32 to vector<2x1xf32>
    %35 = arith.mulf %28, %34 : vector<2x1xf32>
    %36 = math.log %18 : vector<2x8xf32>
    %37 = vector.broadcast %35 : vector<2x1xf32> to vector<2x8xf32>
    %38 = arith.addf %37, %36 : vector<2x8xf32>
    %39 = vector.shape_cast %38 : vector<2x8xf32> to vector<1x2x8xf32>
    %c0_20 = arith.constant 0 : index
    %c0_21 = arith.constant 0 : index
    %c0_22 = arith.constant 0 : index
    %40 = vector.load %arg4[%c0_20, %c0_21, %c0_22] : memref<1x2x8xf32, #tpu.memory_space<vmem>>, vector<1x2x8xf32>
    tpu.vector_store %arg4[%c0_20, %c0_21, %c0_22], %39 {strides = array<i32>} : memref<1x2x8xf32, #tpu.memory_space<vmem>>, vector<1x2x8xf32>,
    %41 = vector.shape_cast %4 : vector<2x1x16xf32> to vector<2x16xf32>
    %42 = vector.shape_cast %41 : vector<2x16xf32> to vector<1x2x16xf32>
    %c0_23 = arith.constant 0 : index
    %c0_24 = arith.constant 0 : index
    %c0_25 = arith.constant 0 : index
    %43 = vector.load %arg5[%c0_23, %c0_24, %c0_25] : memref<1x2x16xf32, #tpu.memory_space<vmem>>, vector<1x2x16xf32>
    tpu.vector_store %arg5[%c0_23, %c0_24, %c0_25], %42 {strides = array<i32>} : memref<1x2x16xf32, #tpu.memory_space<vmem>>, vector<1x2x16xf32>,
    %44 = vector.shape_cast %27 : vector<2x16xf32> to vector<1x2x16xf32>
    %c0_26 = arith.constant 0 : index
    %c0_27 = arith.constant 0 : index
    %c0_28 = arith.constant 0 : index
    %45 = vector.load %arg6[%c0_26, %c0_27, %c0_28] : memref<1x2x16xf32, #tpu.memory_space<vmem>>, vector<1x2x16xf32>
    tpu.vector_store %arg6[%c0_26, %c0_27, %c0_28], %44 {strides = array<i32>} : memref<1x2x16xf32, #tpu.memory_space<vmem>>, vector<1x2x16xf32>,
    %cst_29 = arith.constant 3.33333325 : f32
    %46 = vector.broadcast %cst_29 : f32 to vector<2x1xf32>
    %47 = arith.mulf %28, %46 : vector<2x1xf32>
    %48 = math.log %21 : vector<2x16xf32>
    %49 = vector.broadcast %47 : vector<2x1xf32> to vector<2x16xf32>
    %50 = arith.addf %49, %48 : vector<2x16xf32>
    %51 = vector.shape_cast %50 : vector<2x16xf32> to vector<1x2x16xf32>
    %c0_30 = arith.constant 0 : index
    %c0_31 = arith.constant 0 : index
    %c0_32 = arith.constant 0 : index
    %52 = vector.load %arg7[%c0_30, %c0_31, %c0_32] : memref<1x2x16xf32, #tpu.memory_space<vmem>>, vector<1x2x16xf32>
    tpu.vector_store %arg7[%c0_30, %c0_31, %c0_32], %51 {strides = array<i32>} : memref<1x2x16xf32, #tpu.memory_space<vmem>>, vector<1x2x16xf32>,
    return
  }
  func.func @transform_0(%arg0: i32) -> (i32, i32, i32) {
    %c0_i32 = arith.constant 0 : i32
    %c0_i32_0 = arith.constant 0 : i32
    %c0_i32_1 = arith.constant 0 : i32
    return %arg0, %c0_i32, %c0_i32_0 : i32, i32, i32
  }
  func.func @transform_1(%arg0: i32) -> (i32, i32, i32) {
    %c0_i32 = arith.constant 0 : i32
    %c0_i32_0 = arith.constant 0 : i32
    %c0_i32_1 = arith.constant 0 : i32
    return %arg0, %c0_i32, %c0_i32_0 : i32, i32, i32
  }
  func.func @transform_2(%arg0: i32) -> (i32, i32, i32) {
    %c0_i32 = arith.constant 0 : i32
    %c0_i32_0 = arith.constant 0 : i32
    %c0_i32_1 = arith.constant 0 : i32
    return %arg0, %c0_i32, %c0_i32_0 : i32, i32, i32
  }
  func.func @transform_3(%arg0: i32) -> (i32, i32, i32) {
    %c0_i32 = arith.constant 0 : i32
    %c0_i32_0 = arith.constant 0 : i32
    %c0_i32_1 = arith.constant 0 : i32
    return %arg0, %c0_i32, %c0_i32_0 : i32, i32, i32
  }
  func.func @transform_4(%arg0: i32) -> (i32, i32, i32) {
    %c0_i32 = arith.constant 0 : i32
    %c0_i32_0 = arith.constant 0 : i32
    %c0_i32_1 = arith.constant 0 : i32
    return %arg0, %c0_i32, %c0_i32_0 : i32, i32, i32
  }
  func.func @transform_5(%arg0: i32) -> (i32, i32, i32) {
    %c0_i32 = arith.constant 0 : i32
    %c0_i32_0 = arith.constant 0 : i32
    %c0_i32_1 = arith.constant 0 : i32
    return %arg0, %c0_i32, %c0_i32_0 : i32, i32, i32
  }
  func.func @transform_6(%arg0: i32) -> (i32, i32, i32) {
    %c0_i32 = arith.constant 0 : i32
    %c0_i32_0 = arith.constant 0 : i32
    %c0_i32_1 = arith.constant 0 : i32
    return %arg0, %c0_i32, %c0_i32_0 : i32, i32, i32
  }
}

</mosaic_0001>

<bundles_post_ra>
// kernel: local_align_pallas.1
= control target key start
LH: loop header
LB: loop body
LE: loop exit
PB: predicated region body
PF: predicated region fallthrough
CT: control target
= control target key end

     0   :  { %12 = vsyncpa [#allocation3], 0  ;;  %s258_s21 = smov [#allocation2]   ;;  %s396_s0 = inlined_call_operand.hbm [shape: f32[2,8,16], index: 0, kind: input, shape index: {}]   ;;  %s397_s1 = inlined_call_operand.vmem [shape: f32[1,2,8], index: 1, kind: output, shape index: {0}]   ;;  %s398_s2 = inlined_call_operand.vmem [shape: f32[1,2,8], index: 2, kind: output, shape index: {1}]   ;;  %s399_s3 = inlined_call_operand.vmem [shape: f32[1,2,8], index: 3, kind: output, shape index: {2}]   ;;  %s400_s4 = inlined_call_operand.vmem [shape: f32[1,2,16], index: 4, kind: output, shape index: {3}]   ;;  %s401_s5 = inlined_call_operand.vmem [shape: f32[1,2,16], index: 5, kind: output, shape index: {4}]   ;;  %s402_s6 = inlined_call_operand.vmem [shape: f32[1,2,16], index: 6, kind: output, shape index: {5}]  }
   0x1   :  { %s18_s22 = sshll.u32 %s258_s21, 4  ;;  %s234_s25 = scalar_lea.hbm %s396_s0, 256  ;;  %s19_s22 = int_to_ptr.vmem [resolvable:$true] %s18_s22 }
   0x2   :  { %p235_p0 = scmp.ne.s32.totalorder %s396_s0, %s234_s25  ;;  %p238_p1 = scmp.lt.u32.totalorder %s234_s25, %s396_s0 }
   0x4   :  { %p240_p2 = pnand %p238_p1, %p235_p0 }
   0x6   :  { %243 = shalt.err (!%p240_p2)
}
   0x7   :  { %s244_s30 = scalar_lea.vmem %s19_s22, 256  ;;  %p249_p4 = scmp.lt.s32.totalorder %s19_s22, %s19_s22 }
   0x8   :  { %p245_p3 = scmp.ne.s32.totalorder %s19_s22, %s244_s30  ;;  %p250_p5 = scmp.lt.s32.totalorder %s244_s30, %s244_s30 }
   0xa   :  { %p251_p6 = por %p250_p5, %p249_p4 }
   0xc   :  { %p252_p7 = pnand %p251_p6, %p245_p3 }
   0xe   :  { %255 = shalt.err (!%p252_p7)
}
   0xf   :  { %s259_s7 = smov 128   ;;  %s260_s8 = smov 8  }
  0x10   :  { %24 = dma.hbm_to_vmem [thread:$0]  %s396_s0, 256, %s19_s22, [#allocation3], %s259_s7, %s259_s7, %s260_s8  }
  0x11   :  { %256 = dma.done.wait [#allocation3], 256  }
  0x12   :  { %257 = vsyncadd [#allocation3], 4294967040  ;;  %vm30_vm0 = vcmask 130048   ;;  %v308_v0 = vld [vmem:[#allocation2] sm:$0xff]  ;;  %v310_v1 = vld [vmem:[#allocation2 + $0x8] sm:$0xff]  ;;  %vm133_vm1 = vcmask 1041409   ;;  %v123_v34 = vlaneseq }
  0x13   :  { %v31_v2 = vsel %vm30_vm0, %v308_v0, -inf  ;;  %v34_v3 = vsel %vm30_vm0, %v310_v1, -inf  ;;  %vm176_vm4 = vcmask 123904   ;;  %vm136_vm6 = vcmask 58368  }
  0x14   :  { %32 = vmax.xlane.f32.xlu0 %v31_v2  ;;  %v37_v4 = vrot.slane %v31_v2, 4  ;;  %v43_v5 = vrot.slane %v34_v3, 4  ;;  %v124_v35 = vand.u32 127, %v123_v34  ;;  %v126_v36 = vshrl.u32 %v123_v34, 7 }
  0x16   :  { %v38_v6 = vmax.f32 %v31_v2, %v37_v4  ;;  %v44_v7 = vmax.f32 %v34_v3, %v43_v5  ;;  %v346_v38 = vsub.s32 %v124_v35, %v126_v36 }
  0x18   :  { %v39_v8 = vrot.slane %v38_v6, 2  ;;  %v45_v9 = vrot.slane %v44_v7, 2  ;;  %35 = vmax.xlane.f32.xlu0 %v34_v3 }
  0x1a   :  { %v40_v10 = vmax.f32 %v38_v6, %v39_v8  ;;  %v46_v11 = vmax.f32 %v44_v7, %v45_v9 }
  0x1c   :  { %v41_v12 = vrot.slane %v40_v10, 1  ;;  %v47_v13 = vrot.slane %v46_v11, 1 }
  0x1e   :  { %v316_v14 = vmax.f32 %v40_v10, %v41_v12  ;;  %v318_v15 = vmax.f32 %v46_v11, %v47_v13 }
  0x20   :  { %vm51_vm2 = vcmp.eq.f32.partialorder %v308_v0, %v316_v14  ;;  %vm52_vm3 = vcmp.eq.f32.partialorder %v310_v1, %v318_v15  ;;  %v174_v16 = vsel %vm133_vm1, %v318_v15, %v316_v14 }
  0x21   :  { %v105_v17 = vsel %vm51_vm2, -inf, %v308_v0  ;;  %v106_v18 = vsel %vm52_vm3, -inf, %v310_v1  ;;  %177 = vst.msk [vmem:[%s400_s4] sm:$0x3] %vm176_vm4, %v174_v16 }
  0x22   :  { %v107_v19 = vsel %vm30_vm0, %v105_v17, -inf  ;;  %v114_v20 = vsel %vm30_vm0, %v106_v18, -inf }
  0x23   :  { %v108_v21 = vrot.slane %v107_v19, 4  ;;  %v115_v22 = vrot.slane %v114_v20, 4 }
  0x25   :  { %v109_v23 = vmax.f32 %v107_v19, %v108_v21  ;;  %v116_v24 = vmax.f32 %v114_v20, %v115_v22 }
  0x27   :  { %v110_v25 = vrot.slane %v109_v23, 2  ;;  %v117_v26 = vrot.slane %v116_v24, 2 }
  0x29   :  { %v111_v27 = vmax.f32 %v109_v23, %v110_v25  ;;  %v118_v28 = vmax.f32 %v116_v24, %v117_v26 }
  0x2b   :  { %v112_v29 = vrot.slane %v111_v27, 1  ;;  %v119_v30 = vrot.slane %v118_v28, 1 }
  0x2d   :  { %v113_v31 = vmax.f32 %v111_v27, %v112_v29  ;;  %v120_v32 = vmax.f32 %v118_v28, %v119_v30 }
  0x2f   :  { %v180_v33 = vsel %vm133_vm1, %v120_v32, %v113_v31 }
  0x30   :  { %182 = vst.msk [vmem:[%s401_s5] sm:$0x3] %vm176_vm4, %v180_v33 }
  0xa1   :  { %v33_v37 = vpop.xlane.xlu0 %32 }
  0xa2   :  { %v53_v39 = vrot.slane %v33_v37, 4  ;;  %vm49_vm5 = vcmp.eq.f32.partialorder %v308_v0, %v33_v37  ;;  %v128_v45 = vrot.slane %v33_v37, %v346_v38 }
  0xa3   :  { %v97_v40 = vsel %vm49_vm5, -inf, %v308_v0 }
  0xa4   :  { %v54_v41 = vmax.f32 %v33_v37, %v53_v39  ;;  %v99_v42 = vsel %vm30_vm0, %v97_v40, -inf }
  0xa5   :  { %100 = vmax.xlane.f32.xlu0 %v99_v42  ;;  %v36_v43 = vpop.xlane.xlu0 %35 }
  0xa6   :  { %v55_v44 = vrot.slane %v54_v41, 2  ;;  %v59_v46 = vrot.slane %v36_v43, 4  ;;  %v132_v47 = vrot.slane %v36_v43, %v346_v38  ;;  %vm50_vm7 = vcmp.eq.f32.partialorder %v310_v1, %v36_v43 }
  0xa7   :  { %v98_v12 = vsel %vm50_vm7, -inf, %v310_v1 }
  0xa8   :  { %v56_v48 = vmax.f32 %v54_v41, %v55_v44  ;;  %v60_v49 = vmax.f32 %v36_v43, %v59_v46  ;;  %v134_v50 = vsel %vm133_vm1, %v132_v47, %v128_v45  ;;  %v102_v18 = vsel %vm30_vm0, %v98_v12, -inf }
  0xa9   :  { %137 = vst.msk [vmem:[%s397_s1] sm:$0x3] %vm136_vm6, %v134_v50 }
  0xaa   :  { %v57_v51 = vrot.slane %v56_v48, 1  ;;  %v61_v52 = vrot.slane %v60_v49, 2 }
  0xac   :  { %v58_v53 = vmax.f32 %v56_v48, %v57_v51  ;;  %v62_v54 = vmax.f32 %v60_v49, %v61_v52 }
  0xae   :  { %v65_v55 = vsub.f32 %v308_v0, %v58_v53  ;;  %v63_v56 = vrot.slane %v62_v54, 1  ;;  %v151_v27 = vmul.f32 3.3333333, %v58_v53 }
  0xb0   :  { %v67_v57 = vmul.f32 3.3333333, %v65_v55  ;;  %v64_v58 = vmax.f32 %v62_v54, %v63_v56 }
  0xb2   :  { %v66_v59 = vsub.f32 %v310_v1, %v64_v58  ;;  %v69_v60 = vmul.f32 1.442695, %v67_v57  ;;  %v152_v1 = vmul.f32 3.3333333, %v64_v58 }
  0xb4   :  { %v68_v61 = vmul.f32 3.3333333, %v66_v59  ;;  %222 = vpow2.f32 %v69_v60 }
  0xb6   :  { %v71_v62 = vmul.f32 1.442695, %v68_v61 }
  0xb8   :  { %224 = vpow2.f32 %v71_v62 }
  0xbe   :  { %v223_v63 = vpop.eup %222 }
  0xbf   :  { %v73_v2 = vsel %vm49_vm5, 0.0, %v223_v63  ;;  %v81_v3 = vsel %vm51_vm2, 0.0, %v223_v63 }
  0xc0   :  { %v75_v4 = vsel %vm30_vm0, %v73_v2, 0.0  ;;  %v83_v5 = vsel %vm30_vm0, %v81_v3, 0.0 }
  0xc1   :  { %76 = vadd.xlane.f32.xlu1 %v75_v4  ;;  %v84_v6 = vrot.slane %v83_v5, 4 }
  0xc2   :  { %v225_v7 = vpop.eup %224 }
  0xc3   :  { %v74_v8 = vsel %vm50_vm7, 0.0, %v225_v7  ;;  %v85_v9 = vadd.f32 %v84_v6, %v83_v5  ;;  %v82_v10 = vsel %vm52_vm3, 0.0, %v225_v7 }
  0xc4   :  { %v78_v11 = vsel %vm30_vm0, %v74_v8, 0.0  ;;  %v90_v0 = vsel %vm30_vm0, %v82_v10, 0.0 }
  0xc5   :  { %79 = vadd.xlane.f32.xlu1 %v78_v11  ;;  %v86_v13 = vrot.slane %v85_v9, 2  ;;  %v91_v14 = vrot.slane %v90_v0, 4 }
  0xc7   :  { %v87_v16 = vadd.f32 %v86_v13, %v85_v9  ;;  %v92_v17 = vadd.f32 %v91_v14, %v90_v0 }
  0xc9   :  { %103 = vmax.xlane.f32.xlu1 %v102_v18  ;;  %v88_v19 = vrot.slane %v87_v16, 1  ;;  %v93_v20 = vrot.slane %v92_v17, 2 }
  0xcb   :  { %v89_v21 = vadd.f32 %v88_v19, %v87_v16  ;;  %v94_v22 = vadd.f32 %v93_v20, %v92_v17 }
  0xcd   :  { %226 = vlog2.f32 %v89_v21  ;;  %v95_v15 = vrot.slane %v94_v22, 1 }
  0xcf   :  { %v96_v23 = vadd.f32 %v95_v15, %v94_v22 }
  0xd1   :  { %228 = vlog2.f32 %v96_v23 }
  0xd7   :  { %v227_v24 = vpop.eup %226 }
  0xd8   :  { %v184_v25 = vmul.f32 0.6931472, %v227_v24 }
  0xda   :  { %v187_v29 = vadd.f32 %v184_v25, %v151_v27 }
  0xdb   :  { %v229_v26 = vpop.eup %228 }
  0xdc   :  { %v186_v28 = vmul.f32 0.6931472, %v229_v26 }
  0xde   :  { %v188_v30 = vadd.f32 %v186_v28, %v152_v1 }
  0xe0   :  { %v191_v31 = vsel %vm133_vm1, %v188_v30, %v187_v29 }
  0xe1   :  { %193 = vst.msk [vmem:[%s402_s6] sm:$0x3] %vm176_vm4, %v191_v31 }
 0x132   :  { %v101_v34 = vpop.xlane.xlu0 %100 }
 0x133   :  { %v143_v36 = vrot.slane %v101_v34, %v346_v38 }
 0x14e   :  { %v77_v32 = vpop.xlane.xlu1 %76 }
 0x14f   :  { %230 = vlog2.f32 %v77_v32 }
 0x152   :  { %v80_v33 = vpop.xlane.xlu1 %79 }
 0x153   :  { %232 = vlog2.f32 %v80_v33 }
 0x156   :  { %v104_v35 = vpop.xlane.xlu1 %103 }
 0x157   :  { %v147_v37 = vrot.slane %v104_v35, %v346_v38 }
 0x159   :  { %v231_v39 = vpop.eup %230  ;;  %v148_v40 = vsel %vm133_vm1, %v147_v37, %v143_v36 }
 0x15a   :  { %v154_v41 = vmul.f32 0.6931472, %v231_v39  ;;  %150 = vst.msk [vmem:[%s398_s2] sm:$0x3] %vm136_vm6, %v148_v40 }
 0x15c   :  { %v157_v43 = vadd.f32 %v154_v41, %v151_v27 }
 0x15d   :  { %v233_v42 = vpop.eup %232 }
 0x15e   :  { %v156_v44 = vmul.f32 0.6931472, %v233_v42  ;;  %v164_v46 = vrot.slane %v157_v43, %v346_v38 }
 0x160   :  { %v158_v45 = vadd.f32 %v156_v44, %v152_v1 }
 0x162   :  { %v168_v47 = vrot.slane %v158_v45, %v346_v38 }
 0x164   :  { %v169_v48 = vsel %vm133_vm1, %v168_v47, %v164_v46 }
 0x165   :  { %171 = vst.msk [vmem:[%s399_s3] sm:$0x3] %vm136_vm6, %v169_v48 }
 0x166   :  { %218 = vsyncpa [#allocation3], 1 }

</bundles_post_ra>
